<compile_context>
chip_gen: v7x
topology: tpu7x:2x2x1
jax: 0.10.0
libtpu: 0.0.40
codegen_flags: <defaults>
</compile_context>

<pallas_src>
import functools
import math

import jax
import jax.numpy as jnp
from jax import lax
from jax.experimental import pallas as pl
from jax.experimental.pallas import tpu as pltpu

HI = lax.Precision.HIGHEST  # reference-path matmul precision
_LN_EPS = 1e-5


# --------------------------------------------------------------------------
# Generation-aware VMEM budget / default tiles
# --------------------------------------------------------------------------
def _tpu_vmem_capacity_bytes():
    try:
        return int(pltpu.get_tpu_info().vmem_capacity_bytes)
    except Exception:
        return 128 * 1024 * 1024  # assume a 128 MiB part if the query fails


_VMEM_CAP = _tpu_vmem_capacity_bytes()
VMEM_LIMIT = min(int(_VMEM_CAP * 0.6), 100 * 1024 * 1024)

if _VMEM_CAP <= 64 * 1024 * 1024:
    # v7x-class (64 MiB per TensorCore): smaller row/hidden tiles.
    TILE_M, TILE_N, TILE_K, TILE_H, TILE_KV = 128, 512, 512, 256, 512
else:
    # v5e / v6e (128 MiB): larger reduction tiles amortize per-step overhead.
    TILE_M, TILE_N, TILE_K, TILE_H, TILE_KV = 256, 512, 1024, 512, 512


def _sublane_granule(dtype):
    return {4: 8, 2: 16, 1: 32}.get(jnp.dtype(dtype).itemsize, 8)


def _pick_tile(dim, preferred, granule):
    """Largest multiple of `granule` <= preferred that divides dim, else dim."""
    if dim <= preferred:
        return dim
    t = (preferred // granule) * granule
    while t >= granule:
        if dim % t == 0:
            return t
        t -= granule
    return dim


def _ln_rows(x, g, b, eps=_LN_EPS):
    x = x.astype(jnp.float32)
    mu = jnp.mean(x, axis=-1, keepdims=True)
    xc = x - mu
    var = jnp.mean(xc * xc, axis=-1, keepdims=True)
    return xc * lax.rsqrt(var + eps) * g.astype(jnp.float32) + b.astype(jnp.float32)


# --------------------------------------------------------------------------
# Fused LN1 + merged QKV projection:  out = LN(x) @ [Wq | Wk | Wv]
# grid (M/tm, N/tn); LN(x) computed once per row-tile into scratch at j==0.
# --------------------------------------------------------------------------
def _ln_qkv_kernel(x_ref, g_ref, b_ref, w_ref, o_ref, xn_ref):
    @pl.when(pl.program_id(1) == 0)
    def _():
        xn_ref[...] = _ln_rows(x_ref[...], g_ref[...], b_ref[...]).astype(xn_ref.dtype)

    o_ref[...] = jnp.dot(xn_ref[...], w_ref[...],
                         preferred_element_type=jnp.float32).astype(o_ref.dtype)


def ln_qkv_pallas(x, gamma, beta, w):
    M, D = x.shape
    N = w.shape[1]
    tm = _pick_tile(M, TILE_M, _sublane_granule(x.dtype))
    tn = _pick_tile(N, TILE_N, 128)
    grid = (M // tm, N // tn)
    return pl.pallas_call(
        _ln_qkv_kernel,
        out_shape=jax.ShapeDtypeStruct((M, N), x.dtype),
        grid_spec=pltpu.PrefetchScalarGridSpec(
            num_scalar_prefetch=0,
            grid=grid,
            in_specs=[
                pl.BlockSpec((tm, D), lambda i, j: (i, 0)),
                pl.BlockSpec((1, D), lambda i, j: (0, 0)),
                pl.BlockSpec((1, D), lambda i, j: (0, 0)),
                pl.BlockSpec((D, tn), lambda i, j: (0, j)),
            ],
            out_specs=pl.BlockSpec((tm, tn), lambda i, j: (i, j)),
            scratch_shapes=[pltpu.VMEM((tm, D), x.dtype)],
        ),
        compiler_params=pltpu.CompilerParams(
            dimension_semantics=("parallel", "arbitrary"),
            vmem_limit_bytes=VMEM_LIMIT,
        ),
    )(x, gamma.reshape(1, D), beta.reshape(1, D), w)


# --------------------------------------------------------------------------
# Linear with bias + residual fused in the epilogue (used for the out-proj)
# --------------------------------------------------------------------------
def _linear_residual_kernel(x_ref, w_ref, b_ref, res_ref, o_ref, acc_ref):
    @pl.when(pl.program_id(2) == 0)
    def _():
        acc_ref[...] = jnp.zeros_like(acc_ref)

    acc_ref[...] += jnp.dot(x_ref[...], w_ref[...],
                            preferred_element_type=jnp.float32)

    @pl.when(pl.program_id(2) == pl.num_programs(2) - 1)
    def _():
        o_ref[...] = (acc_ref[...]
                      + b_ref[...].astype(jnp.float32)
                      + res_ref[...].astype(jnp.float32)).astype(o_ref.dtype)


def linear_residual_pallas(x, w, b, res):
    M, K = x.shape
    K2, N = w.shape
    assert K == K2 and res.shape == (M, N)
    tm = _pick_tile(M, TILE_M, _sublane_granule(x.dtype))
    tn = _pick_tile(N, TILE_N, 128)
    tk = _pick_tile(K, TILE_K, 128)
    grid = (M // tm, N // tn, K // tk)
    return pl.pallas_call(
        _linear_residual_kernel,
        out_shape=jax.ShapeDtypeStruct((M, N), x.dtype),
        grid_spec=pltpu.PrefetchScalarGridSpec(
            num_scalar_prefetch=0,
            grid=grid,
            in_specs=[
                pl.BlockSpec((tm, tk), lambda i, j, k: (i, k)),
                pl.BlockSpec((tk, tn), lambda i, j, k: (k, j)),
                pl.BlockSpec((1, tn), lambda i, j, k: (0, j)),
                pl.BlockSpec((tm, tn), lambda i, j, k: (i, j)),
            ],
            out_specs=pl.BlockSpec((tm, tn), lambda i, j, k: (i, j)),
            scratch_shapes=[pltpu.VMEM((tm, tn), jnp.float32)],
        ),
        compiler_params=pltpu.CompilerParams(
            dimension_semantics=("parallel", "parallel", "arbitrary"),
            vmem_limit_bytes=VMEM_LIMIT,
        ),
    )(x, w, b.reshape(1, N), res)


# --------------------------------------------------------------------------
# Fused LN2 + FFN + residual:  out = res + GELU(LN(x)@W1+b1)@W2 + b2
# Hidden dim H is the (last, "arbitrary") grid axis; W1/W2 stream in H-tiles,
# LN(x) is computed once per row-tile at h==0, b2/res added in the epilogue.
# --------------------------------------------------------------------------
def _ffn_kernel(x_ref, g_ref, b_ref, w1_ref, b1_ref, w2_ref, b2_ref, res_ref,
                o_ref, xn_ref, acc_ref):
    h_id = pl.program_id(1)

    @pl.when(h_id == 0)
    def _():
        acc_ref[...] = jnp.zeros_like(acc_ref)
        xn_ref[...] = _ln_rows(x_ref[...], g_ref[...], b_ref[...]).astype(xn_ref.dtype)

    h = jnp.dot(xn_ref[...], w1_ref[...], preferred_element_type=jnp.float32)
    h = jax.nn.gelu(h + b1_ref[...].astype(jnp.float32), approximate=False)
    acc_ref[...] += jnp.dot(h.astype(w2_ref.dtype), w2_ref[...],
                            preferred_element_type=jnp.float32)

    @pl.when(h_id == pl.num_programs(1) - 1)
    def _():
        o_ref[...] = (acc_ref[...]
                      + b2_ref[...].astype(jnp.float32)
                      + res_ref[...].astype(jnp.float32)).astype(o_ref.dtype)


def ffn_pallas(x, gamma, beta, w1, b1, w2, b2, res):
    M, D = x.shape
    D2, H = w1.shape
    assert D == D2 and w2.shape == (H, D) and res.shape == (M, D)
    tm = _pick_tile(M, TILE_M, _sublane_granule(x.dtype))
    th = _pick_tile(H, TILE_H, 128)
    grid = (M // tm, H // th)
    return pl.pallas_call(
        _ffn_kernel,
        out_shape=jax.ShapeDtypeStruct((M, D), x.dtype),
        grid_spec=pltpu.PrefetchScalarGridSpec(
            num_scalar_prefetch=0,
            grid=grid,
            in_specs=[
                pl.BlockSpec((tm, D), lambda i, h: (i, 0)),   # x (LN2 input)
                pl.BlockSpec((1, D), lambda i, h: (0, 0)),    # ln2 gamma
                pl.BlockSpec((1, D), lambda i, h: (0, 0)),    # ln2 beta
                pl.BlockSpec((D, th), lambda i, h: (0, h)),   # W1 hidden-tile
                pl.BlockSpec((1, th), lambda i, h: (0, h)),   # b1 hidden-tile
                pl.BlockSpec((th, D), lambda i, h: (h, 0)),   # W2 hidden-tile
                pl.BlockSpec((1, D), lambda i, h: (0, 0)),    # b2 (epilogue)
                pl.BlockSpec((tm, D), lambda i, h: (i, 0)),   # residual
            ],
            out_specs=pl.BlockSpec((tm, D), lambda i, h: (i, 0)),
            scratch_shapes=[pltpu.VMEM((tm, D), x.dtype),
                            pltpu.VMEM((tm, D), jnp.float32)],
        ),
        compiler_params=pltpu.CompilerParams(
            dimension_semantics=("parallel", "arbitrary"),
            vmem_limit_bytes=VMEM_LIMIT,
        ),
    )(x, gamma.reshape(1, D), beta.reshape(1, D), w1, b1.reshape(1, H),
      w2, b2.reshape(1, D), res)


# --------------------------------------------------------------------------
# Flash-style causal GQA attention with on-chip RoPE.
#   q is laid out (B, n_kv, ratio*T, hd): all q-heads sharing a KV head are
#   stacked along rows of one grid step.  K/V stream in kv-tiles along the
#   "arbitrary" last grid axis; online-softmax state (m, l, acc) is scratch.
#   RoPE uses the rotate-half form (weights were de-interleaved offline).
# --------------------------------------------------------------------------
def _attention_kernel(q_ref, k_ref, v_ref, cos_ref, sin_ref, o_ref,
                      qrot_ref, m_ref, l_ref, acc_ref, *, seq_len, scale):
    kc = pl.program_id(2)
    tkv, hd = k_ref.shape
    hd2 = hd // 2

    def rot_half(x):  # swap the two contiguous halves; sign lives in sin table
        return jnp.concatenate([x[:, hd2:], x[:, :hd2]], axis=-1)

    @pl.when(kc == 0)
    def _():
        m_ref[...] = jnp.full(m_ref.shape, -jnp.inf, dtype=m_ref.dtype)
        l_ref[...] = jnp.zeros_like(l_ref)
        acc_ref[...] = jnp.zeros_like(acc_ref)
        q = q_ref[...].astype(jnp.float32)
        q_rot = (q * cos_ref[...] + rot_half(q) * sin_ref[...]) * scale
        qrot_ref[...] = q_rot.astype(qrot_ref.dtype)

    kv_start = pl.multiple_of(kc * tkv, tkv)
    k = k_ref[...].astype(jnp.float32)
    ck = cos_ref[pl.ds(kv_start, tkv), :]
    sk = sin_ref[pl.ds(kv_start, tkv), :]
    k_rot = (k * ck + rot_half(k) * sk).astype(k_ref.dtype)

    # Scores: contract head dim of both operands (no explicit k transpose),
    # operands in stored dtype, f32 accumulation on the MXU.
    s = lax.dot_general(qrot_ref[...], k_rot, (((1,), (1,)), ((), ())),
                        preferred_element_type=jnp.float32)        # (R, tkv)

    rows = s.shape[0]
    row_t = lax.broadcasted_iota(jnp.int32, (rows, tkv), 0) % seq_len
    col_t = lax.broadcasted_iota(jnp.int32, (rows, tkv), 1) + kv_start
    s = jnp.where(col_t <= row_t, s, -jnp.inf)                     # causal

    m_prev = m_ref[...]
    m_new = jnp.maximum(m_prev, jnp.max(s, axis=-1, keepdims=True))
    alpha = jnp.exp(m_prev - m_new)
    p = jnp.exp(s - m_new)
    l_ref[...] = alpha * l_ref[...] + jnp.sum(p, axis=-1, keepdims=True)
    acc_ref[...] = alpha * acc_ref[...] + lax.dot_general(
        p.astype(v_ref.dtype), v_ref[...], (((1,), (0,)), ((), ())),
        preferred_element_type=jnp.float32)
    m_ref[...] = m_new

    @pl.when(kc == pl.num_programs(2) - 1)
    def _():
        o_ref[...] = (acc_ref[...] *
                      pl.reciprocal(l_ref[...], approx=True)).astype(o_ref.dtype)


def attention_pallas(q, k, v, cos_q, sin_q):
    """q: (B, nKV, ratio*T, hd); k, v: (B, nKV, T, hd); cos/sin: (ratio*T, hd)."""
    B, nKV, R, hd = q.shape
    T = k.shape[2]
    tkv = _pick_tile(T, TILE_KV, _sublane_granule(k.dtype))
    grid = (B, nKV, T // tkv)
    kern = functools.partial(_attention_kernel, seq_len=T,
                             scale=1.0 / math.sqrt(hd))
    return pl.pallas_call(
        kern,
        out_shape=jax.ShapeDtypeStruct((B, nKV, R, hd), q.dtype),
        grid_spec=pltpu.PrefetchScalarGridSpec(
            num_scalar_prefetch=0,
            grid=grid,
            in_specs=[
                pl.BlockSpec((None, None, R, hd), lambda b, g, kc: (b, g, 0, 0)),
                pl.BlockSpec((None, None, tkv, hd), lambda b, g, kc: (b, g, kc, 0)),
                pl.BlockSpec((None, None, tkv, hd), lambda b, g, kc: (b, g, kc, 0)),
                pl.BlockSpec((R, hd), lambda b, g, kc: (0, 0)),
                pl.BlockSpec((R, hd), lambda b, g, kc: (0, 0)),
            ],
            out_specs=pl.BlockSpec((None, None, R, hd),
                                   lambda b, g, kc: (b, g, 0, 0)),
            scratch_shapes=[
                pltpu.VMEM((R, hd), q.dtype),       # RoPE'd + scaled q
                pltpu.VMEM((R, 1), jnp.float32),    # running max
                pltpu.VMEM((R, 1), jnp.float32),    # running denom
                pltpu.VMEM((R, hd), jnp.float32),   # accumulator
            ],
        ),
        compiler_params=pltpu.CompilerParams(
            dimension_semantics=("parallel", "parallel", "arbitrary"),
            vmem_limit_bytes=VMEM_LIMIT,
        ),
    )(q, k, v, cos_q, sin_q)


# --------------------------------------------------------------------------
# Final LN + reward head fused (applied only to the last-token rows)
# --------------------------------------------------------------------------
def _final_head_kernel(x_ref, g_ref, b_ref, w_ref, bw_ref, o_ref):
    y = _ln_rows(x_ref[...], g_ref[...], b_ref[...])
    r = jnp.dot(y.astype(w_ref.dtype), w_ref[...],
                preferred_element_type=jnp.float32)
    o_ref[...] = (r + bw_ref[...].astype(jnp.float32)).astype(o_ref.dtype)


def final_head_pallas(x_last, gamma, beta, w, b):
    Bq, D = x_last.shape
    return pl.pallas_call(
        _final_head_kernel,
        out_shape=jax.ShapeDtypeStruct((Bq, 1), x_last.dtype),
        grid_spec=pltpu.PrefetchScalarGridSpec(
            num_scalar_prefetch=0,
            grid=(1,),
            in_specs=[
                pl.BlockSpec((Bq, D), lambda i: (0, 0)),
                pl.BlockSpec((1, D), lambda i: (0, 0)),
                pl.BlockSpec((1, D), lambda i: (0, 0)),
                pl.BlockSpec((D, 1), lambda i: (0, 0)),
                pl.BlockSpec((1, 1), lambda i: (0, 0)),
            ],
            out_specs=pl.BlockSpec((Bq, 1), lambda i: (0, 0)),
        ),
        compiler_params=pltpu.CompilerParams(vmem_limit_bytes=VMEM_LIMIT),
    )(x_last, gamma.reshape(1, D), beta.reshape(1, D), w, b.reshape(1, 1))


# --------------------------------------------------------------------------
# RoPE tables + weight preparation (interleaved-pair convention of the spec)
# --------------------------------------------------------------------------
def rope_tables(head_dim, seq_len, theta=10000.0):
    inv = 1.0 / (theta ** (jnp.arange(0, head_dim, 2, dtype=jnp.float32) / head_dim))
    pos = jnp.arange(seq_len, dtype=jnp.float32)
    freqs = jnp.outer(pos, inv)                 # (T, hd//2)
    return jnp.cos(freqs), jnp.sin(freqs)


def _deinterleave_cols(w, n_heads, hd):
    """Permute per-head output columns to [even dims..., odd dims...]."""
    perm = jnp.concatenate([jnp.arange(0, hd, 2), jnp.arange(1, hd, 2)])
    perm = (jnp.arange(n_heads)[:, None] * hd + perm[None, :]).reshape(-1)
    return w[:, perm]


def prepare_pallas_params(params, cfg):
    """Fused / column-permuted weights consumed by the Pallas path."""
    D = cfg["n_embd"]
    nH, nKV = cfg["n_head"], cfg["n_kv_heads"]
    hd = D // nH
    Nkv = nKV * hd
    blocks = []
    for blk in params["blocks"]:
        wq = _deinterleave_cols(blk["wq"], nH, hd)
        wk = _deinterleave_cols(blk["wkv"][:, :Nkv], nKV, hd)
        wv = blk["wkv"][:, Nkv:]
        blocks.append({"wqkv": jnp.concatenate([wq, wk, wv], axis=1)})
    return {"blocks": blocks}


# --------------------------------------------------------------------------
# Full reward-model forward (Pallas path)
# --------------------------------------------------------------------------
def forward_pallas(idx, params, cfg):
    B, T = idx.shape
    D = cfg["n_embd"]
    nH, nKV = cfg["n_head"], cfg["n_kv_heads"]
    hd = D // nH
    ratio = nH // nKV
    R = ratio * T
    Nkv = nKV * hd

    kp = prepare_pallas_params(params, cfg)

    # TODO(synk): token-embedding gather stays in plain JAX.
    x = jnp.take(params["tok_emb"], idx, axis=0).reshape(B * T, D)

    # rotate-half RoPE tables for the de-interleaved q/k layout
    cos, sin = rope_tables(hd, T, cfg["theta"])               # (T, hd//2)
    cos_full = jnp.concatenate([cos, cos], axis=-1)           # (T, hd)
    sin_full = jnp.concatenate([-sin, sin], axis=-1)          # (T, hd)
    cos_q = jnp.tile(cos_full, (ratio, 1))                    # (R, hd)
    sin_q = jnp.tile(sin_full, (ratio, 1))

    for blk, kblk in zip(params["blocks"], kp["blocks"]):
        # ---- fused LN1 + merged QKV projection ----
        qkv = ln_qkv_pallas(x, blk["ln1_g"], blk["ln1_b"], kblk["wqkv"])
        q = qkv[:, :D]
        kk = qkv[:, D:D + Nkv]
        vv = qkv[:, D + Nkv:]
        # TODO(synk): head-major layout via XLA transposes; fold into BlockSpecs.
        q = q.reshape(B, T, nH, hd).transpose(0, 2, 1, 3).reshape(B, nKV, R, hd)
        kk = kk.reshape(B, T, nKV, hd).transpose(0, 2, 1, 3)
        vv = vv.reshape(B, T, nKV, hd).transpose(0, 2, 1, 3)
        # ---- flash-style causal GQA attention, RoPE applied on-chip ----
        attn = attention_pallas(q, kk, vv, cos_q, sin_q)       # (B, nKV, R, hd)
        attn = attn.reshape(B, nH, T, hd).transpose(0, 2, 1, 3).reshape(B * T, D)
        # ---- out-projection with bias + residual fused in the epilogue ----
        x = linear_residual_pallas(attn, blk["wo"], blk["bo"], x)
        # ---- fused LN2 + FFN with residual epilogue ----
        x = ffn_pallas(x, blk["ln2_g"], blk["ln2_b"], blk["w1"], blk["b1"],
                       blk["w2"], blk["b2"], x)

    # last token sliced BEFORE the final LN; LN_f + reward head fused.
    x_last = x.reshape(B, T, D)[:, -1, :]                       # (B, D)
    return final_head_pallas(x_last, params["lnf_g"], params["lnf_b"],
                             params["rw_w"], params["rw_b"])    # (B, 1)


# --------------------------------------------------------------------------
# Pure-JAX reference (same math as the PyTorch module, HIGHEST precision)
# --------------------------------------------------------------------------
def _ref_layernorm(x, g, b, eps=_LN_EPS):
    mu = jnp.mean(x, axis=-1, keepdims=True)
    xc = x - mu
    var = jnp.mean(xc * xc, axis=-1, keepdims=True)
    return xc * lax.rsqrt(var + eps) * g + b


def _ref_apply_rope(q, k, cos, sin):
    c = cos[None, None, :, :]
    s = sin[None, None, :, :]

    def rot(x):
        xe = x[..., 0::2]
        xo = x[..., 1::2]
        oe = xe * c - xo * s
        oo = xo * c + xe * s
        return jnp.stack([oe, oo], axis=-1).reshape(x.shape)

    return rot(q), rot(k)


def forward_reference(idx, params, cfg):
    B, T = idx.shape
    D = cfg["n_embd"]
    nH, nKV = cfg["n_head"], cfg["n_kv_heads"]
    hd = D // nH
    ratio = nH // nKV

    x = jnp.take(params["tok_emb"], idx, axis=0)
    cos, sin = rope_tables(hd, T, cfg["theta"])
    mask = jnp.tril(jnp.ones((T, T), dtype=bool))

    for blk in params["blocks"]:
        h = _ref_layernorm(x, blk["ln1_g"], blk["ln1_b"])
        q = jnp.dot(h, blk["wq"], precision=HI)
        kv = jnp.dot(h, blk["wkv"], precision=HI)
        q = q.reshape(B, T, nH, hd).transpose(0, 2, 1, 3)
        k, v = jnp.split(kv, 2, axis=-1)
        k = k.reshape(B, T, nKV, hd).transpose(0, 2, 1, 3)
        v = v.reshape(B, T, nKV, hd).transpose(0, 2, 1, 3)
        q, k = _ref_apply_rope(q, k, cos, sin)
        k = jnp.repeat(k, ratio, axis=1)
        v = jnp.repeat(v, ratio, axis=1)
        s = jnp.einsum("bhqd,bhkd->bhqk", q, k, precision=HI) / math.sqrt(hd)
        s = jnp.where(mask[None, None], s, -jnp.inf)
        p = jax.nn.softmax(s, axis=-1)
        attn = jnp.einsum("bhqk,bhkd->bhqd", p, v, precision=HI)
        attn = attn.transpose(0, 2, 1, 3).reshape(B, T, D)
        attn = jnp.dot(attn, blk["wo"], precision=HI) + blk["bo"]
        x = x + attn
        h2 = _ref_layernorm(x, blk["ln2_g"], blk["ln2_b"])
        f = jax.nn.gelu(jnp.dot(h2, blk["w1"], precision=HI) + blk["b1"],
                        approximate=False)
        f = jnp.dot(f, blk["w2"], precision=HI) + blk["b2"]
        x = x + f

    xf = _ref_layernorm(x, params["lnf_g"], params["lnf_b"])
    last = xf[:, -1, :]
    return jnp.dot(last, params["rw_w"], precision=HI) + params["rw_b"]


# --------------------------------------------------------------------------
# Parameter init (normal(0, 0.02) weights, zero biases, like _init_weights)
# --------------------------------------------------------------------------
def init_params(key, cfg):
    D = cfg["n_embd"]
    H = 4 * D
    nH, nKV = cfg["n_head"], cfg["n_kv_heads"]
    hd = D // nH
    V, L = cfg["vocab_size"], cfg["n_layer"]

    keys = iter(jax.random.split(key, 2 + 5 * L))

    def w(shape):
        return 0.02 * jax.random.normal(next(keys), shape, dtype=jnp.float32)

    params = {
        "tok_emb": w((V, D)),
        "lnf_g": jnp.ones((1, D), jnp.float32),
        "lnf_b": jnp.zeros((1, D), jnp.float32),
        "rw_w": w((D, 1)),
        "rw_b": jnp.zeros((1, 1), jnp.float32),
        "blocks": [],
    }
    for _ in range(L):
        params["blocks"].append({
            "ln1_g": jnp.ones((1, D), jnp.float32),
            "ln1_b": jnp.zeros((1, D), jnp.float32),
            "ln2_g": jnp.ones((1, D), jnp.float32),
            "ln2_b": jnp.zeros((1, D), jnp.float32),
            "wq": w((D, D)),
            "wkv": w((D, 2 * nKV * hd)),
            "wo": w((D, D)),
            "bo": jnp.zeros((1, D), jnp.float32),
            "w1": w((D, H)),
            "b1": jnp.zeros((1, H), jnp.float32),
            "w2": w((H, D)),
            "b2": jnp.zeros((1, D), jnp.float32),
        })
    return params


if __name__ == "__main__":
    cfg = dict(vocab_size=128, n_embd=32, n_head=4, n_kv_heads=2,
               n_layer=2, theta=10000.0)
    B, T = 2, 8

    root = jax.random.PRNGKey(0)
    kp, ki = jax.random.split(root)
    params = init_params(kp, cfg)
    idx = jax.random.randint(ki, (B, T), 0, cfg["vocab_size"], dtype=jnp.int32)

    reward = forward_pallas(idx, params, cfg)
    reward = jax.block_until_ready(reward)
    assert reward.shape == (B, 1)

    ref = jax.block_until_ready(forward_reference(idx, params, cfg))
    # Tolerance accounts for default-precision MXU matmuls (reference uses
    # HIGHEST) plus the EUP approximate reciprocal in the softmax denominator.
    assert jnp.allclose(reward, ref, atol=2e-3, rtol=1e-2), (
        f"mismatch vs reference: {reward} vs {ref}")

    print("KERNEL_OK")
</pallas_src>

<mosaic_0001>
module attributes {stable_mosaic.version = 11 : i64} {
  func.func @_ln_qkv_kernel(%arg0: i32, %arg1: i32, %arg2: memref<16x32xf32, #tpu.memory_space<vmem>>, %arg3: memref<1x32xf32, #tpu.memory_space<vmem>>, %arg4: memref<1x32xf32, #tpu.memory_space<vmem>>, %arg5: memref<32x64xf32, #tpu.memory_space<vmem>>, %arg6: memref<16x64xf32, #tpu.memory_space<vmem>>, %arg7: memref<16x32xf32, #tpu.memory_space<vmem>>) attributes {dimension_semantics = [#tpu.dimension_semantics<parallel>, #tpu.dimension_semantics<arbitrary>], iteration_bounds = array<i64: 1, 1>, scalar_prefetch = 0 : i64, scratch_operands = 1 : i64, tpu.core_type = #tpu.core_type<tc>, window_params = [{transform_indices = @transform_0, window_bounds = array<i64: 16, 32>}, {pipeline_mode = #tpu.pipeline_mode<synchronous>, transform_indices = @transform_1, window_bounds = array<i64: 1, 32>}, {pipeline_mode = #tpu.pipeline_mode<synchronous>, transform_indices = @transform_2, window_bounds = array<i64: 1, 32>}, {transform_indices = @transform_3, window_bounds = array<i64: 32, 64>}, {transform_indices = @transform_4, window_bounds = array<i64: 16, 64>}]} {
    %c0_i32 = arith.constant 0 : i32
    %0 = arith.cmpi eq, %arg1, %c0_i32 : i32
    %1 = arith.extui %0 : i1 to i32
    %c0_i32_0 = arith.constant 0 : i32
    %2 = arith.cmpi ne, %1, %c0_i32_0 : i32
    scf.if %2 {
      %c0_6 = arith.constant 0 : index
      %c0_7 = arith.constant 0 : index
      %7 = vector.load %arg2[%c0_6, %c0_7] : memref<16x32xf32, #tpu.memory_space<vmem>>, vector<16x32xf32>
      %c0_8 = arith.constant 0 : index
      %c0_9 = arith.constant 0 : index
      %8 = vector.load %arg3[%c0_8, %c0_9] : memref<1x32xf32, #tpu.memory_space<vmem>>, vector<1x32xf32>
      %c0_10 = arith.constant 0 : index
      %c0_11 = arith.constant 0 : index
      %9 = vector.load %arg4[%c0_10, %c0_11] : memref<1x32xf32, #tpu.memory_space<vmem>>, vector<1x32xf32>
      %cst_12 = arith.constant dense<0.000000e+00> : vector<16xf32>
      %10 = vector.multi_reduction <add>, %7, %cst_12 [1] : vector<16x32xf32> to vector<16xf32>
      %11 = vector.shape_cast %10 : vector<16xf32> to vector<16x1xf32>
      %cst_13 = arith.constant 3.200000e+01 : f32
      %12 = vector.broadcast %cst_13 : f32 to vector<16x1xf32>
      %13 = arith.divf %11, %12 : vector<16x1xf32>
      %14 = vector.broadcast %13 : vector<16x1xf32> to vector<16x32xf32>
      %15 = arith.subf %7, %14 : vector<16x32xf32>
      %16 = arith.mulf %15, %15 : vector<16x32xf32>
      %cst_14 = arith.constant dense<0.000000e+00> : vector<16xf32>
      %17 = vector.multi_reduction <add>, %16, %cst_14 [1] : vector<16x32xf32> to vector<16xf32>
      %18 = vector.shape_cast %17 : vector<16xf32> to vector<16x1xf32>
      %cst_15 = arith.constant 3.200000e+01 : f32
      %19 = vector.broadcast %cst_15 : f32 to vector<16x1xf32>
      %20 = arith.divf %18, %19 : vector<16x1xf32>
      %cst_16 = arith.constant 9.99999974E-6 : f32
      %21 = vector.broadcast %cst_16 : f32 to vector<16x1xf32>
      %22 = arith.addf %20, %21 : vector<16x1xf32>
      %23 = math.rsqrt %22 : vector<16x1xf32>
      %24 = vector.broadcast %23 : vector<16x1xf32> to vector<16x32xf32>
      %25 = arith.mulf %15, %24 : vector<16x32xf32>
      %26 = vector.broadcast %8 : vector<1x32xf32> to vector<16x32xf32>
      %27 = arith.mulf %25, %26 : vector<16x32xf32>
      %28 = vector.broadcast %9 : vector<1x32xf32> to vector<16x32xf32>
      %29 = arith.addf %27, %28 : vector<16x32xf32>
      %c0_17 = arith.constant 0 : index
      %c0_18 = arith.constant 0 : index
      %30 = vector.load %arg7[%c0_17, %c0_18] : memref<16x32xf32, #tpu.memory_space<vmem>>, vector<16x32xf32>
      tpu.vector_store %arg7[%c0_17, %c0_18], %29 {strides = array<i32>} : memref<16x32xf32, #tpu.memory_space<vmem>>, vector<16x32xf32>,
    } else {
    }
    %c0 = arith.constant 0 : index
    %c0_1 = arith.constant 0 : index
    %3 = vector.load %arg7[%c0, %c0_1] : memref<16x32xf32, #tpu.memory_space<vmem>>, vector<16x32xf32>
    %c0_2 = arith.constant 0 : index
    %c0_3 = arith.constant 0 : index
    %4 = vector.load %arg5[%c0_2, %c0_3] : memref<32x64xf32, #tpu.memory_space<vmem>>, vector<32x64xf32>
    %cst = arith.constant dense<0.000000e+00> : vector<16x64xf32>
    %5 = tpu.matmul %3, %4, %cst {dimension_numbers = #tpu.dot_dimension_numbers<[1], [0], [0], [1], [0, 0, 1, 1], [], []>} : vector<16x32xf32>, vector<32x64xf32>, vector<16x64xf32> -> vector<16x64xf32>
    %c0_4 = arith.constant 0 : index
    %c0_5 = arith.constant 0 : index
    %6 = vector.load %arg6[%c0_4, %c0_5] : memref<16x64xf32, #tpu.memory_space<vmem>>, vector<16x64xf32>
    tpu.vector_store %arg6[%c0_4, %c0_5], %5 {strides = array<i32>} : memref<16x64xf32, #tpu.memory_space<vmem>>, vector<16x64xf32>,
    return
  }
  func.func @transform_0(%arg0: i32, %arg1: i32) -> (i32, i32) {
    %c0_i32 = arith.constant 0 : i32
    %c0_i32_0 = arith.constant 0 : i32
    return %arg0, %c0_i32 : i32, i32
  }
  func.func @transform_1(%arg0: i32, %arg1: i32) -> (i32, i32) {
    %c0_i32 = arith.constant 0 : i32
    %c0_i32_0 = arith.constant 0 : i32
    %c0_i32_1 = arith.constant 0 : i32
    return %c0_i32, %c0_i32_0 : i32, i32
  }
  func.func @transform_2(%arg0: i32, %arg1: i32) -> (i32, i32) {
    %c0_i32 = arith.constant 0 : i32
    %c0_i32_0 = arith.constant 0 : i32
    %c0_i32_1 = arith.constant 0 : i32
    return %c0_i32, %c0_i32_0 : i32, i32
  }
  func.func @transform_3(%arg0: i32, %arg1: i32) -> (i32, i32) {
    %c0_i32 = arith.constant 0 : i32
    %c0_i32_0 = arith.constant 0 : i32
    return %c0_i32, %arg1 : i32, i32
  }
  func.func @transform_4(%arg0: i32, %arg1: i32) -> (i32, i32) {
    %c0_i32 = arith.constant 0 : i32
    return %arg0, %arg1 : i32, i32
  }
}

</mosaic_0001>

<bundles_post_ra>
// kernel: tpu_custom_call.1
= control target key start
LH: loop header
LB: loop body
LE: loop exit
PB: predicated region body
PF: predicated region fallthrough
CT: control target
= control target key end

     0   :  { %9 = vsyncpa [#allocation4], 0  ;;  %s514_s0 = inlined_call_operand.hbm [shape: f32[16,32], index: 0, kind: input, shape index: {}]   ;;  %s515_s1 = inlined_call_operand.hbm [shape: f32[1,32], index: 1, kind: input, shape index: {}]   ;;  %s516_s2 = inlined_call_operand.hbm [shape: f32[1,32], index: 2, kind: input, shape index: {}]   ;;  %s517_s3 = inlined_call_operand.hbm [shape: f32[32,64], index: 3, kind: input, shape index: {}]   ;;  %s518_s4 = inlined_call_operand.hbm [shape: f32[16,64], index: 4, kind: output, shape index: {}]  }
   0x1   :  { %10 = vsyncpa [#allocation7], 0 }
   0x2   :  { %11 = vsyncpa [#allocation10], 0 }
   0x3   :  { %12 = vsyncpa [#allocation5], 0  ;;  %s391_s15 = smov [#allocation6]   ;;  %s392_s17 = smov [#allocation3]  }
   0x4   :  { %s31_s16 = sshll.u32 %s391_s15, 4  ;;  %s18_s18 = sshll.u32 %s392_s17, 4  ;;  %s32_s16 = int_to_ptr.vmem [resolvable:$true] %s31_s16  ;;  %s423_s18 = int_to_ptr.vmem [resolvable:$true] %s18_s18 }
   0x5   :  { %s273_s21 = scalar_lea.hbm %s515_s1, 16 }
   0x6   :  { %p274_p0 = scmp.ne.s32.totalorder %s515_s1, %s273_s21  ;;  %p277_p1 = scmp.lt.u32.totalorder %s273_s21, %s515_s1 }
   0x8   :  { %p279_p2 = pnand %p277_p1, %p274_p0 }
   0xa   :  { %282 = shalt.err (!%p279_p2)
}
   0xb   :  { %s283_s26 = scalar_lea.vmem %s32_s16, 16  ;;  %s287_s27 = scalar_lea.vmem %s32_s16, 32 }
   0xc   :  { %p284_p3 = scmp.ne.s32.totalorder %s32_s16, %s283_s26  ;;  %p288_p4 = scmp.lt.s32.totalorder %s32_s16, %s32_s16 }
   0xd   :  { %p289_p5 = scmp.lt.s32.totalorder %s287_s27, %s283_s26 }
   0xf   :  { %p290_p6 = por %p289_p5, %p288_p4 }
  0x11   :  { %p291_p7 = pnand %p290_p6, %p284_p3 }
  0x13   :  { %294 = shalt.err (!%p291_p7)
}
  0x14   :  { %34 = dma.hbm_to_vmem [thread:$0]  %s515_s1, 16, %s32_s16, [#allocation7]  }
  0x15   :  { %s295_s6 = scalar_lea.hbm %s514_s0, 256 }
  0x16   :  { %p296_p8 = scmp.ne.s32.totalorder %s514_s0, %s295_s6  ;;  %p299_p9 = scmp.lt.u32.totalorder %s295_s6, %s514_s0 }
  0x18   :  { %p301_p10 = pnand %p299_p9, %p296_p8 }
  0x1a   :  { %304 = shalt.err (!%p301_p10)
}
  0x1b   :  { %s305_s11 = scalar_lea.vmem %s423_s18, 256  ;;  %p310_p12 = scmp.lt.s32.totalorder %s423_s18, %s423_s18 }
  0x1c   :  { %p306_p11 = scmp.ne.s32.totalorder %s423_s18, %s305_s11  ;;  %p311_p13 = scmp.lt.s32.totalorder %s305_s11, %s305_s11 }
  0x1e   :  { %p312_p0 = por %p311_p13, %p310_p12 }
  0x20   :  { %p313_p1 = pnand %p312_p0, %p306_p11 }
  0x22   :  { %316 = shalt.err (!%p313_p1)
}
  0x23   :  { %s393_s1 = smov 128   ;;  %s394_s12 = smov 8  }
  0x24   :  { %24 = dma.hbm_to_vmem [thread:$0]  %s514_s0, 256, %s423_s18, [#allocation4], %s393_s1, %s393_s1, %s394_s12  }
  0x25   :  { %s395_s15 = smov [#allocation8]   ;;  %s396_s17 = smov [#allocation9]  }
  0x26   :  { %s41_s16 = sshll.u32 %s395_s15, 4  ;;  %s50_s19 = sshll.u32 %s396_s17, 4  ;;  %s42_s16 = int_to_ptr.vmem [resolvable:$true] %s41_s16  ;;  %s457_s19 = int_to_ptr.vmem [resolvable:$true] %s50_s19 }
  0x27   :  { %s317_s22 = scalar_lea.hbm %s516_s2, 16 }
  0x28   :  { %p318_p2 = scmp.ne.s32.totalorder %s516_s2, %s317_s22  ;;  %p321_p3 = scmp.lt.u32.totalorder %s317_s22, %s516_s2 }
  0x2a   :  { %p323_p4 = pnand %p321_p3, %p318_p2 }
  0x2c   :  { %326 = shalt.err (!%p323_p4)
}
  0x2d   :  { %s327_s0 = scalar_lea.vmem %s42_s16, 16  ;;  %s331_s18 = scalar_lea.vmem %s42_s16, 32 }
  0x2e   :  { %p328_p5 = scmp.ne.s32.totalorder %s42_s16, %s327_s0  ;;  %p332_p6 = scmp.lt.s32.totalorder %s42_s16, %s42_s16 }
  0x2f   :  { %p333_p7 = scmp.lt.s32.totalorder %s331_s18, %s327_s0 }
  0x31   :  { %p334_p8 = por %p333_p7, %p332_p6 }
  0x33   :  { %p335_p9 = pnand %p334_p8, %p328_p5 }
  0x35   :  { %338 = shalt.err (!%p335_p9)
}
  0x36   :  { %44 = dma.hbm_to_vmem [thread:$0]  %s516_s2, 16, %s42_s16, [#allocation7]  }
  0x37   :  { %s339_s5 = scalar_lea.hbm %s517_s3, 512 }
  0x38   :  { %p340_p10 = scmp.ne.s32.totalorder %s517_s3, %s339_s5  ;;  %p343_p11 = scmp.lt.u32.totalorder %s339_s5, %s517_s3 }
  0x3a   :  { %p345_p12 = pnand %p343_p11, %p340_p10 }
  0x3c   :  { %348 = shalt.err (!%p345_p12)
}
  0x3d   :  { %s349_s10 = scalar_lea.vmem %s457_s19, 512  ;;  %p354_p0 = scmp.lt.s32.totalorder %s457_s19, %s457_s19 }
  0x3e   :  { %p350_p13 = scmp.ne.s32.totalorder %s457_s19, %s349_s10  ;;  %p355_p1 = scmp.lt.s32.totalorder %s349_s10, %s349_s10 }
  0x40   :  { %p356_p2 = por %p355_p1, %p354_p0 }
  0x42   :  { %p357_p3 = pnand %p356_p2, %p350_p13 }
  0x44   :  { %360 = shalt.err (!%p357_p3)
}
  0x45   :  { %56 = dma.hbm_to_vmem [thread:$0]  %s517_s3, 512, %s457_s19, [#allocation10], %s393_s1, %s393_s1, %s394_s12  }
  0x46   :  { %383 = dma.done.wait [#allocation4], 256  }
  0x47   :  { %384 = vsyncadd [#allocation4], 4294967040 }
  0x48   :  { %385 = dma.done.wait [#allocation7], 32  }
  0x49   :  { %386 = vsyncadd [#allocation7], 4294967264 }
  0x4a   :  { %387 = dma.done.wait [#allocation10], 512  }
  0x4b   :  { %388 = vsyncadd [#allocation10], 4294966784  ;;  %vm77_vm0 = vcmask 261120   ;;  %v73_v0 = vld [vmem:[#allocation3] sm:$0xff]  ;;  %v74_v1 = vld [vmem:[#allocation3 + $0x8] sm:$0xff]  ;;  %s397_s3 = smov [#allocation11]  }
  0x4c   :  { %v78_v2 = vsel %vm77_vm0, %v73_v0, 0.0  ;;  %v81_v3 = vsel %vm77_vm0, %v74_v1, 0.0  ;;  %v125_v14 = vld [vmem:[#allocation9] sm:$0xff]  ;;  %v126_v15 = vld [vmem:[#allocation9 + $0x8] sm:$0xff]  ;;  %v127_v17 = vld [vmem:[#allocation9 + $0x10] sm:$0xff]  ;;  %s219_s13 = sshll.u32 %s397_s3, 4  ;;  %s220_s13 = int_to_ptr.vmem [resolvable:$true] %s219_s13 }
  0x4d   :  { %79 = vadd.xlane.f32.xlu0 %v78_v2  ;;  %v254_v16 = vpack.c.bf16 %v126_v15, %v125_v14  ;;  %v128_v18 = vld [vmem:[#allocation9 + $0x18] sm:$0xff]  ;;  %vm211_vm1 = vcmask 523264   ;;  %s361_s14 = scalar_lea.vmem %s220_s13, 256  ;;  %p366_p5 = scmp.lt.s32.totalorder %s220_s13, %s220_s13 }
  0x4e   :  { %v258_v19 = vpack.c.bf16 %v128_v18, %v127_v17  ;;  %v233_v27 = vld [vmem:[#allocation6] ss:$0 sm:$0xff]  ;;  %v234_v29 = vld [vmem:[#allocation8] ss:$0 sm:$0xff]  ;;  %p362_p4 = scmp.ne.s32.totalorder %s220_s13, %s361_s14  ;;  %p367_p6 = scmp.lt.s32.totalorder %s361_s14, %s361_s14 }
  0x4f   :  { %255 = vmatprep.subr.bf16.mxu0 %v254_v16 }
  0x50   :  { %257 = vmatpush3.bf16.msra.mxu0 %v254_v16  ;;  %p368_p7 = por %p367_p6, %p366_p5 }
  0x51   :  { %82 = vadd.xlane.f32.xlu0 %v81_v3  ;;  %259 = vmatprep.subr.bf16.mxu0 %v258_v19 }
  0x52   :  { %p369_p8 = pnand %p368_p7, %p362_p4 }
  0x54   :  { %261 = vmatpush3.bf16.msra.mxu0 %v258_v19 }
  0xda   :  { %v80_v4 = vpop.xlane.xlu0 %79 }
  0xdb   :  { %v85_v5 = vmul.f32 0.03125, %v80_v4 }
  0xdd   :  { %v87_v6 = vsub.f32 %v73_v0, %v85_v5 }
  0xde   :  { %v83_v7 = vpop.xlane.xlu0 %82 }
  0xdf   :  { %v86_v8 = vmul.f32 0.03125, %v83_v7  ;;  %v89_v9 = vmul.f32 %v87_v6, %v87_v6 }
  0xe1   :  { %v88_v10 = vsub.f32 %v74_v1, %v86_v8  ;;  %v91_v11 = vsel %vm77_vm0, %v89_v9, 0.0 }
  0xe2   :  { %92 = vadd.xlane.f32.xlu1 %v91_v11 }
  0xe3   :  { %v90_v12 = vmul.f32 %v88_v10, %v88_v10 }
  0xe5   :  { %v94_v13 = vsel %vm77_vm0, %v90_v12, 0.0 }
  0xe6   :  { %95 = vadd.xlane.f32.xlu1 %v94_v13 }
 0x16f   :  { %v93_v20 = vpop.xlane.xlu1 %92 }
 0x170   :  { %v97_v21 = vmul.f32 0.03125, %v93_v20 }
 0x172   :  { %v99_v22 = vadd.f32 1e-05, %v97_v21 }
 0x173   :  { %v96_v23 = vpop.xlane.xlu1 %95 }
 0x174   :  { %269 = vrsqrt.f32 %v99_v22  ;;  %v98_v24 = vmul.f32 0.03125, %v96_v23 }
 0x176   :  { %v100_v25 = vadd.f32 1e-05, %v98_v24 }
 0x178   :  { %271 = vrsqrt.f32 %v100_v25 }
 0x17e   :  { %v270_v26 = vpop.eup %269 }
 0x17f   :  { %v103_v28 = vmul.f32 %v270_v26, %v87_v6 }
 0x181   :  { %v111_v30 = vmul.f32 %v233_v27, %v103_v28 }
 0x182   :  { %v272_v31 = vpop.eup %271 }
 0x183   :  { %v119_v32 = vadd.f32 %v234_v29, %v111_v30  ;;  %v104_v33 = vmul.f32 %v272_v31, %v88_v10 }
 0x185   :  { %121 = vst.msk [vmem:[#allocation2] sm:$0xff] %vm77_vm0, %v119_v32  ;;  %v112_v34 = vmul.f32 %v233_v27, %v104_v33 }
 0x187   :  { %v120_v35 = vadd.f32 %v234_v29, %v112_v34 }
 0x189   :  { %122 = vst.msk [vmem:[#allocation2 + $0x8] sm:$0xff] %vm77_vm0, %v120_v35 }
 0x18c   :  { %v123_v36 = vld [vmem:[#allocation2] sm:$0xff] }
 0x18d   :  { %251 = vmatprep.mubr.msk.f32.mxu0 %vm77_vm0, %v123_v36 }
 0x190   :  { %v124_v37 = vld [vmem:[#allocation2 + $0x8] sm:$0xff] }
 0x191   :  { %252 = vmatmul.mubr.msk.f32.vlgmr.msra.gmra.mrb[0].mxu0 %vm77_vm0, %v124_v37 }
 0x264   :  { %v253_v38 = vpop.f32.mrb[0].mxu0 }
 0x265   :  { %213 = vst.msk [vmem:[#allocation11 + $0x8] sm:$0xff] %vm211_vm1, %v253_v38  ;;  %v202_v39 = vpop.f32.mrb[1].mxu0 }
 0x266   :  { %212 = vst.msk [vmem:[#allocation11] sm:$0xff] %vm211_vm1, %v202_v39 }
 0x267   :  { %372 = shalt.err (!%p369_p8)
}
 0x268   :  { %s373_s17 = scalar_lea.hbm %s518_s4, 256 }
 0x269   :  { %p374_p9 = scmp.ne.s32.totalorder %s518_s4, %s373_s17  ;;  %p377_p10 = scmp.lt.u32.totalorder %s373_s17, %s518_s4 }
 0x26b   :  { %p379_p11 = pnand %p377_p10, %p374_p9 }
 0x26d   :  { %382 = shalt.err (!%p379_p11)
}
 0x26e   :  { %225 = dma.vmem_to_hbm [thread:$0]  %s220_s13, 256, %s518_s4, [#allocation5], %s393_s1, %s393_s1, %s394_s12  }
 0x26f   :  { %389 = dma.done.wait [#allocation5], 256  }
 0x270   :  { %390 = vsyncadd [#allocation5], 4294967040 }
 0x271   :  { %229 = vsyncpa [#allocation4], 1 }
 0x272   :  { %230 = vsyncpa [#allocation7], 1 }
 0x273   :  { %231 = vsyncpa [#allocation10], 1 }
 0x274   :  { %232 = vsyncpa [#allocation5], 1 }

</bundles_post_ra>
